<compile_context>
chip_gen: v7x
topology: tpu7x:2x2x1
jax: 0.10.0
libtpu: 0.0.40
codegen_flags: <defaults>
</compile_context>

<pallas_src>
import jax
import jax.numpy as jnp
from jax.experimental import pallas as pl
from jax.experimental.pallas import tpu as pltpu

_LANE = 128
_SUBLANE = 8
_MAX_LANES = 4096                       # lane-dense width cap (multiple of 128)
_TARGET_BLOCK_BYTES = 4 * 1024 * 1024   # ~4 MiB per array per block
_VMEM_LIMIT_BYTES = 48 * 1024 * 1024    # 2 bufs x (in + out) x 4 MiB << 48 MiB
                                        # (safe on v5e/v6e 128 MiB and v7x 64 MiB)


def _identity_kernel(x_ref, o_ref):
    # ActQuantizerII.forward: return x unchanged.
    o_ref[...] = x_ref[...]


def _choose_2d_view(total: int, itemsize: int):
    """Pick a lane-dense 2D view (rows, lanes) and an aligned sublane block."""
    if total % _LANE != 0:
        return None
    # Largest lane width (multiple of 128, capped) that divides the tensor.
    lanes = _LANE
    while lanes * 2 <= _MAX_LANES and total % (lanes * 2) == 0:
        lanes *= 2
    rows = total // lanes

    # Biggest block that fits the VMEM budget (~4 MiB per array).
    target_rows = max(1, _TARGET_BLOCK_BYTES // (lanes * itemsize))
    if rows <= target_rows:
        return rows, lanes, rows          # single block == full array (always legal)

    block_rows = None
    start = (min(target_rows, rows) // _SUBLANE) * _SUBLANE
    for cand in range(start, 0, -_SUBLANE):   # multiple of 8, divides rows
        if rows % cand == 0:
            block_rows = cand
            break
    if block_rows is None:                # no aligned divisor: one big block
        block_rows = rows
    return rows, lanes, block_rows


def _identity_copy_2d(x2, rows, lanes, block_rows):
    grid = (rows // block_rows,)
    nbytes = rows * lanes * x2.dtype.itemsize
    return pl.pallas_call(
        _identity_kernel,
        out_shape=jax.ShapeDtypeStruct((rows, lanes), x2.dtype),
        grid_spec=pltpu.PrefetchScalarGridSpec(
            num_scalar_prefetch=0,
            grid=grid,
            in_specs=[pl.BlockSpec((block_rows, lanes), lambda i: (i, 0))],
            out_specs=pl.BlockSpec((block_rows, lanes), lambda i: (i, 0)),
        ),
        compiler_params=pltpu.CompilerParams(
            dimension_semantics=("parallel",),
            vmem_limit_bytes=_VMEM_LIMIT_BYTES,
        ),
        # Output aliases the input: no second full-size HBM buffer; in a fused
        # graph the activation is overwritten in place.
        input_output_aliases={0: 0},
        cost_estimate=pl.CostEstimate(
            flops=0, transcendentals=0, bytes_accessed=2 * nbytes),
    )(x2)


def _identity_copy_full(x):
    # Fallback for element counts not divisible by 128: one full-array block
    # (last two block dims equal the full array dims -> legal layout).
    ndim = x.ndim
    return pl.pallas_call(
        _identity_kernel,
        out_shape=jax.ShapeDtypeStruct(x.shape, x.dtype),
        grid_spec=pltpu.PrefetchScalarGridSpec(
            num_scalar_prefetch=0,
            grid=(1,),
            in_specs=[pl.BlockSpec(x.shape, lambda i: (0,) * ndim)],
            out_specs=pl.BlockSpec(x.shape, lambda i: (0,) * ndim),
        ),
        compiler_params=pltpu.CompilerParams(
            dimension_semantics=("arbitrary",),
            vmem_limit_bytes=_VMEM_LIMIT_BYTES,
        ),
        input_output_aliases={0: 0},
        cost_estimate=pl.CostEstimate(
            flops=0, transcendentals=0,
            bytes_accessed=2 * x.size * x.dtype.itemsize),
    )(x)


def act_quantizer_ii(x: jnp.ndarray, quant_scheme: str = "float") -> jnp.ndarray:
    """Pallas equivalent of ActQuantizerII(quant_scheme)(x)."""
    # Parse the scheme exactly like the PyTorch __init__ (config only, unused).
    scheme, num_bits = "float", 32
    if quant_scheme != "float":
        scheme, bits = quant_scheme.split("-")
        num_bits = int(bits)
    del scheme, num_bits  # nothing is really quantized

    total = x.size
    view = _choose_2d_view(total, x.dtype.itemsize)
    if view is None:
        return _identity_copy_full(x)

    rows, lanes, block_rows = view
    x2 = x.reshape(rows, lanes)                 # lane-dense 2D slab
    y2 = _identity_copy_2d(x2, rows, lanes, block_rows)
    return y2.reshape(x.shape)


if __name__ == "__main__":
    key = jax.random.PRNGKey(0)
    # NCHW activation, small shapes: batch=2, channels=4, spatial=16x16
    x = jax.random.normal(key, (2, 4, 16, 16), dtype=jnp.float32)

    y = act_quantizer_ii(x, quant_scheme="LSQ-4")
    y = jax.block_until_ready(y)

    assert y.shape == x.shape and y.dtype == x.dtype
    assert bool(jnp.all(y == x))
    print("KERNEL_OK")
</pallas_src>

<mosaic_0001>
module attributes {stable_mosaic.version = 11 : i64} {
  func.func @_identity_kernel(%arg0: i32, %arg1: memref<1x2048xf32, #tpu.memory_space<vmem>>, %arg2: memref<1x2048xf32, #tpu.memory_space<vmem>>) attributes {dimension_semantics = [#tpu.dimension_semantics<parallel>], iteration_bounds = array<i64: 1>, scalar_prefetch = 0 : i64, scratch_operands = 0 : i64, tpu.core_type = #tpu.core_type<tc>, window_params = [{transform_indices = @transform_0, window_bounds = array<i64: 1, 2048>}, {transform_indices = @transform_1, window_bounds = array<i64: 1, 2048>}]} {
    %c0 = arith.constant 0 : index
    %c0_0 = arith.constant 0 : index
    %0 = vector.load %arg1[%c0, %c0_0] : memref<1x2048xf32, #tpu.memory_space<vmem>>, vector<1x2048xf32>
    %c0_1 = arith.constant 0 : index
    %c0_2 = arith.constant 0 : index
    %1 = vector.load %arg2[%c0_1, %c0_2] : memref<1x2048xf32, #tpu.memory_space<vmem>>, vector<1x2048xf32>
    tpu.vector_store %arg2[%c0_1, %c0_2], %0 {strides = array<i32>} : memref<1x2048xf32, #tpu.memory_space<vmem>>, vector<1x2048xf32>,
    return
  }
  func.func @transform_0(%arg0: i32) -> (i32, i32) {
    %c0_i32 = arith.constant 0 : i32
    %c0_i32_0 = arith.constant 0 : i32
    return %arg0, %c0_i32 : i32, i32
  }
  func.func @transform_1(%arg0: i32) -> (i32, i32) {
    %c0_i32 = arith.constant 0 : i32
    %c0_i32_0 = arith.constant 0 : i32
    return %arg0, %c0_i32 : i32, i32
  }
}

</mosaic_0001>

<bundles_post_ra>
// kernel: tpu_custom_call.1
= control target key start
LH: loop header
LB: loop body
LE: loop exit
PB: predicated region body
PF: predicated region fallthrough
CT: control target
= control target key end

     0   :  { %6 = vsyncpa [#allocation3], 0  ;;  %s126_s0 = inlined_call_operand.hbm [shape: f32[1,2048], index: 0, kind: input, shape index: {}, may-alias: {0,1}]   ;;  %s127_s1 = inlined_call_operand.hbm [shape: f32[1,2048], index: 1, kind: output, shape index: {}, may-alias: {0,1}]  }
   0x1   :  { %7 = vsyncpa [#allocation4], 0  ;;  %s90_s6 = smov [#allocation2]   ;;  %s42_s10 = scalar_lea.hbm %s126_s0, 256 }
   0x2   :  { %s14_s7 = sshll.u32 %s90_s6, 4  ;;  %p43_p0 = scmp.ne.s32.totalorder %s126_s0, %s42_s10  ;;  %s15_s7 = int_to_ptr.vmem [resolvable:$true] %s14_s7 }
   0x3   :  { %p46_p1 = scmp.lt.u32.totalorder %s42_s10, %s126_s0 }
   0x5   :  { %p48_p2 = pnand %p46_p1, %p43_p0 }
   0x7   :  { %51 = shalt.err (!%p48_p2)
}
   0x8   :  { %s52_s15 = scalar_lea.vmem %s15_s7, 256  ;;  %p57_p4 = scmp.lt.s32.totalorder %s15_s7, %s15_s7 }
   0x9   :  { %p53_p3 = scmp.ne.s32.totalorder %s15_s7, %s52_s15  ;;  %p58_p5 = scmp.lt.s32.totalorder %s52_s15, %s52_s15 }
   0xb   :  { %p59_p6 = por %p58_p5, %p57_p4 }
   0xd   :  { %p60_p7 = pnand %p59_p6, %p53_p3 }
   0xf   :  { %63 = shalt.err (!%p60_p7)
}
  0x10   :  { %17 = dma.hbm_to_vmem [thread:$0]  %s126_s0, 256, %s15_s7, [#allocation3]  }
  0x11   :  { %86 = dma.done.wait [#allocation3], 256  }
  0x12   :  { %87 = vsyncadd [#allocation3], 4294967040  ;;  %s91_s18 = smov [#allocation5]   ;;  %v21_v0 = vld [vmem:[#allocation2] sm:$0xff]  ;;  %v22_v1 = vld [vmem:[#allocation2 + $0x8] sm:$0xff] }
  0x13   :  { %s31_s19 = sshll.u32 %s91_s18, 4  ;;  %23 = vst [vmem:[#allocation5] sm:$0xff] %v21_v0  ;;  %24 = vst [vmem:[#allocation5 + $0x8] sm:$0xff] %v22_v1  ;;  %s32_s19 = int_to_ptr.vmem [resolvable:$true] %s31_s19 }
  0x14   :  { %s64_s20 = scalar_lea.vmem %s32_s19, 256  ;;  %p69_p9 = scmp.lt.s32.totalorder %s32_s19, %s32_s19 }
  0x15   :  { %p65_p8 = scmp.ne.s32.totalorder %s32_s19, %s64_s20  ;;  %p70_p10 = scmp.lt.s32.totalorder %s64_s20, %s64_s20 }
  0x17   :  { %p71_p11 = por %p70_p10, %p69_p9 }
  0x19   :  { %p72_p12 = pnand %p71_p11, %p65_p8 }
  0x1b   :  { %75 = shalt.err (!%p72_p12)
}
  0x1c   :  { %s76_s0 = scalar_lea.hbm %s127_s1, 256 }
  0x1d   :  { %p77_p13 = scmp.ne.s32.totalorder %s127_s1, %s76_s0  ;;  %p80_p0 = scmp.lt.u32.totalorder %s76_s0, %s127_s1 }
  0x1f   :  { %p82_p1 = pnand %p80_p0, %p77_p13 }
  0x21   :  { %85 = shalt.err (!%p82_p1)
}
  0x22   :  { %34 = dma.vmem_to_hbm [thread:$0]  %s32_s19, 256, %s127_s1, [#allocation4]  }
  0x23   :  { %88 = dma.done.wait [#allocation4], 256  }
  0x24   :  { %89 = vsyncadd [#allocation4], 4294967040 }
  0x25   :  { %38 = vsyncpa [#allocation3], 1 }
  0x26   :  { %39 = vsyncpa [#allocation4], 1 }

</bundles_post_ra>
